<compile_context>
chip_gen: v7x
topology: tpu7x:2x2x1
jax: 0.10.0
libtpu: 0.0.40
codegen_flags: <defaults>
</compile_context>

<pallas_src>
import jax
import jax.numpy as jnp
from jax import lax
from jax.experimental import pallas as pl
from jax.experimental.pallas import tpu as pltpu


def _band_matrix(size, pad, dtype=jnp.float32):
    """B[a, b] = 1 if |a - b| <= pad else 0 (symmetric ones band; exact in bf16/f32)."""
    a = jnp.arange(size)
    return (jnp.abs(a[:, None] - a[None, :]) <= pad).astype(dtype)


def _make_ncc_kernel(win, eps, D, H, W, use_kron, fuse_d, matmul_dtype):
    inv_win = 1.0 / (float(win) ** 3)
    F = 5
    HW = H * W
    dt = matmul_dtype

    def _stack_fields(i_ref, j_ref):
        # Build the 5-field stack directly in the lane-dense (rows, H*W) layout.
        I = i_ref[...].astype(jnp.float32)          # (D, H*W)
        J = j_ref[...].astype(jnp.float32)          # (D, H*W)
        return jnp.concatenate([I, J, I * I, J * J, I * J], axis=0)   # (5D, H*W)

    def _d_sums(Xp, bd_ref):
        """Box-sum over D for all five fields; Xp is (5D, H*W) plane-summed."""
        if fuse_d:
            # One matmul against block_diag(Bd x5): (5D,5D)@(5D,HW).
            S = jnp.dot(bd_ref[...], Xp.astype(dt),
                        preferred_element_type=jnp.float32)
            return [S[k * D:(k + 1) * D] for k in range(F)]
        Bd = bd_ref[...]
        return [jnp.dot(Bd, Xp[k * D:(k + 1) * D].astype(dt),
                        preferred_element_type=jnp.float32) for k in range(F)]

    def _epilogue(sums, cc_ref, sum_ref):
        I_sum, J_sum, I2_sum, J2_sum, IJ_sum = sums
        # Algebraically identical to the torch code:
        #   cross = IJ - I_sum*J_sum/w ; I_var = I2 - I_sum^2/w ; etc.
        cross = IJ_sum - I_sum * J_sum * inv_win
        I_var = I2_sum - I_sum * I_sum * inv_win
        J_var = J2_sum - J_sum * J_sum * inv_win
        denom = I_var * J_var + eps
        r = pl.reciprocal(denom, approx=True)       # EUP slot (free-ish)
        r = r * (2.0 - denom * r)                   # one Newton step -> ~f32-exact
        cc = cross * cross * r
        cc_ref[...] = -cc                           # fused negation, lane-dense store
        sum_ref[...] = jnp.sum(cc, keepdims=True)   # per-batch sum(cc)

    if use_kron:
        def ncc_kernel(i_ref, j_ref, bplane_ref, bd_ref, cc_ref, sum_ref):
            X = _stack_fields(i_ref, j_ref)                       # (5D, HW)
            # (H,W)-plane box sum for all 5 fields: one full-width MXU matmul.
            Xp = jnp.dot(X.astype(dt), bplane_ref[...],
                         preferred_element_type=jnp.float32)      # (5D, HW)
            _epilogue(_d_sums(Xp, bd_ref), cc_ref, sum_ref)
    else:
        def ncc_kernel(i_ref, j_ref, bw_ref, bh_ref, bd_ref, cc_ref, sum_ref):
            X = _stack_fields(i_ref, j_ref)                       # (5D, HW)
            FD = F * D
            # --- sum over W: (5D*H, W) @ Bw -----------------------------------
            Xw = jnp.dot(X.reshape(FD * H, W).astype(dt), bw_ref[...],
                         preferred_element_type=jnp.float32)
            # --- sum over H: swap minor dims, matmul, swap back ---------------
            Xt = jnp.transpose(Xw.reshape(FD, H, W), (0, 2, 1)).reshape(FD * W, H)
            Xh = jnp.dot(Xt.astype(dt), bh_ref[...],
                         preferred_element_type=jnp.float32)
            Xp = jnp.transpose(Xh.reshape(FD, W, H), (0, 2, 1)).reshape(FD, HW)
            _epilogue(_d_sums(Xp, bd_ref), cc_ref, sum_ref)

    return ncc_kernel


def ncc_pallas(I, J, win=9, eps=1e-5, matmul_dtype=jnp.float32,
               kron_hw_threshold=2048):
    """Replicates NCC.forward: returns (-mean(cc), -cc)."""
    N, C, D, H, W = I.shape
    assert C == 1, "NCC conv weight has a single input channel"
    pad = win // 2
    HW = H * W

    use_kron = HW <= kron_hw_threshold   # fused (H,W)-plane matmul for small planes
    fuse_d = D < 128                     # block-diagonal fused D-sum for small D

    # Lane-dense inputs: (N, D, H*W). Keep native dtype on the wire; cast in-kernel.
    I4 = I.reshape(N, D, HW)
    J4 = J.reshape(N, D, HW)

    Bd = _band_matrix(D, pad, matmul_dtype)
    if fuse_d:
        Bd = jnp.kron(jnp.eye(5, dtype=matmul_dtype), Bd)          # (5D, 5D)

    if use_kron:
        Bplane = jnp.kron(_band_matrix(H, pad, matmul_dtype),
                          _band_matrix(W, pad, matmul_dtype))      # (HW, HW)
        band_inputs = (Bplane,)
        band_specs = [pl.BlockSpec((HW, HW), lambda b: (0, 0))]
    else:
        Bh = _band_matrix(H, pad, matmul_dtype)
        Bw = _band_matrix(W, pad, matmul_dtype)
        band_inputs = (Bw, Bh)
        band_specs = [pl.BlockSpec((W, W), lambda b: (0, 0)),
                      pl.BlockSpec((H, H), lambda b: (0, 0))]

    bd_spec = pl.BlockSpec(Bd.shape, lambda b: (0, 0))

    kernel = _make_ncc_kernel(win, eps, D, H, W, use_kron, fuse_d, matmul_dtype)

    neg_cc, cc_sums = pl.pallas_call(
        kernel,
        out_shape=(
            jax.ShapeDtypeStruct((N, D, HW), jnp.float32),   # -cc, lane-dense
            jax.ShapeDtypeStruct((N, 1, 1), jnp.float32),    # per-batch sum(cc)
        ),
        grid_spec=pltpu.PrefetchScalarGridSpec(
            num_scalar_prefetch=0,
            grid=(N,),
            in_specs=[
                pl.BlockSpec((None, D, HW), lambda b: (b, 0, 0)),
                pl.BlockSpec((None, D, HW), lambda b: (b, 0, 0)),
            ] + band_specs + [bd_spec],
            out_specs=[
                pl.BlockSpec((None, D, HW), lambda b: (b, 0, 0)),
                pl.BlockSpec((None, 1, 1), lambda b: (b, 0, 0)),
            ],
        ),
        compiler_params=pltpu.CompilerParams(
            dimension_semantics=("parallel",),
            # 48 MiB is safe on every generation (v7x has only 64 MiB physical).
            vmem_limit_bytes=48 * 1024 * 1024,
        ),
    )(I4, J4, *band_inputs, Bd)

    neg_cc = neg_cc.reshape(N, 1, D, H, W)
    loss = -(jnp.sum(cc_sums) / float(N * D * H * W))
    return loss, neg_cc


def ncc_reference(I, J, win=9, eps=1e-5):
    """Plain-JAX reference mirroring the PyTorch code (for validation)."""
    pad = win // 2
    weight = jnp.ones((1, 1, win, win, win), jnp.float32)
    dn = ('NCDHW', 'OIDHW', 'NCDHW')

    def conv(x):
        return lax.conv_general_dilated(
            x, weight, window_strides=(1, 1, 1),
            padding=[(pad, pad)] * 3, dimension_numbers=dn,
            precision=lax.Precision.HIGHEST)

    I = I.astype(jnp.float32)
    J = J.astype(jnp.float32)
    I_sum, J_sum = conv(I), conv(J)
    I2_sum, J2_sum, IJ_sum = conv(I * I), conv(J * J), conv(I * J)
    win_size = float(win) ** 3
    u_I, u_J = I_sum / win_size, J_sum / win_size
    cross = IJ_sum - u_J * I_sum - u_I * J_sum + u_I * u_J * win_size
    I_var = I2_sum - 2 * u_I * I_sum + u_I * u_I * win_size
    J_var = J2_sum - 2 * u_J * J_sum + u_J * u_J * win_size
    cc = cross * cross / (I_var * J_var + eps)
    return -1.0 * jnp.mean(cc), -1.0 * cc


if __name__ == "__main__":
    key = jax.random.PRNGKey(0)
    k1, k2, k3, k4 = jax.random.split(key, 4)

    # Case 1: small (H,W) plane -> fused kron(Bh,Bw) path.
    N, C, D, H, W = 2, 1, 16, 16, 16
    I = jax.random.normal(k1, (N, C, D, H, W), jnp.float32)
    J = jax.random.normal(k2, (N, C, D, H, W), jnp.float32)
    loss, neg_cc = ncc_pallas(I, J, win=9, eps=1e-5)
    loss, neg_cc = jax.block_until_ready(loss), jax.block_until_ready(neg_cc)
    ref_loss, ref_neg_cc = ncc_reference(I, J, win=9, eps=1e-5)
    assert jnp.allclose(loss, ref_loss, rtol=1e-4, atol=1e-4)
    assert jnp.allclose(neg_cc, ref_neg_cc, rtol=1e-4, atol=1e-4)

    # Case 2: larger (H,W) plane -> separable W-sum / H-sum / D-sum path.
    N2, D2, H2, W2 = 1, 8, 48, 48
    I2 = jax.random.normal(k3, (N2, 1, D2, H2, W2), jnp.float32)
    J2 = jax.random.normal(k4, (N2, 1, D2, H2, W2), jnp.float32)
    loss2, neg_cc2 = ncc_pallas(I2, J2, win=9, eps=1e-5)
    loss2, neg_cc2 = jax.block_until_ready(loss2), jax.block_until_ready(neg_cc2)
    ref_loss2, ref_neg_cc2 = ncc_reference(I2, J2, win=9, eps=1e-5)
    assert jnp.allclose(loss2, ref_loss2, rtol=1e-4, atol=1e-4)
    assert jnp.allclose(neg_cc2, ref_neg_cc2, rtol=1e-4, atol=1e-4)

    print("KERNEL_OK")
</pallas_src>

<mosaic_0001>
module attributes {stable_mosaic.version = 11 : i64} {
  func.func @ncc_kernel(%arg0: i32, %arg1: memref<1x16x256xf32, #tpu.memory_space<vmem>>, %arg2: memref<1x16x256xf32, #tpu.memory_space<vmem>>, %arg3: memref<256x256xf32, #tpu.memory_space<vmem>>, %arg4: memref<80x80xf32, #tpu.memory_space<vmem>>, %arg5: memref<1x16x256xf32, #tpu.memory_space<vmem>>, %arg6: memref<1x1x1xf32, #tpu.memory_space<vmem>>) attributes {dimension_semantics = [#tpu.dimension_semantics<parallel>], iteration_bounds = array<i64: 2>, scalar_prefetch = 0 : i64, scratch_operands = 0 : i64, tpu.core_type = #tpu.core_type<tc>, window_params = [{transform_indices = @transform_0, window_bounds = array<i64: 1, 16, 256>}, {transform_indices = @transform_1, window_bounds = array<i64: 1, 16, 256>}, {pipeline_mode = #tpu.pipeline_mode<synchronous>, transform_indices = @transform_2, window_bounds = array<i64: 256, 256>}, {pipeline_mode = #tpu.pipeline_mode<synchronous>, transform_indices = @transform_3, window_bounds = array<i64: 80, 80>}, {transform_indices = @transform_4, window_bounds = array<i64: 1, 16, 256>}, {transform_indices = @transform_5, window_bounds = array<i64: 1, 1, 1>}]} {
    %c0 = arith.constant 0 : index
    %c0_0 = arith.constant 0 : index
    %c0_1 = arith.constant 0 : index
    %0 = vector.load %arg1[%c0, %c0_0, %c0_1] : memref<1x16x256xf32, #tpu.memory_space<vmem>>, vector<1x16x256xf32>
    %1 = vector.shape_cast %0 : vector<1x16x256xf32> to vector<16x256xf32>
    %c0_2 = arith.constant 0 : index
    %c0_3 = arith.constant 0 : index
    %c0_4 = arith.constant 0 : index
    %2 = vector.load %arg2[%c0_2, %c0_3, %c0_4] : memref<1x16x256xf32, #tpu.memory_space<vmem>>, vector<1x16x256xf32>
    %3 = vector.shape_cast %2 : vector<1x16x256xf32> to vector<16x256xf32>
    %4 = arith.mulf %1, %1 : vector<16x256xf32>
    %5 = arith.mulf %3, %3 : vector<16x256xf32>
    %6 = arith.mulf %1, %3 : vector<16x256xf32>
    %7 = tpu.concatenate %1, %3, %4, %5, %6 in 0 : vector<16x256xf32>, vector<16x256xf32>, vector<16x256xf32>, vector<16x256xf32>, vector<16x256xf32> -> vector<80x256xf32>
    %c0_5 = arith.constant 0 : index
    %c0_6 = arith.constant 0 : index
    %8 = vector.load %arg3[%c0_5, %c0_6] : memref<256x256xf32, #tpu.memory_space<vmem>>, vector<256x256xf32>
    %cst = arith.constant dense<0.000000e+00> : vector<80x256xf32>
    %9 = tpu.matmul %7, %8, %cst {dimension_numbers = #tpu.dot_dimension_numbers<[1], [0], [0], [1], [0, 0, 1, 1], [], []>} : vector<80x256xf32>, vector<256x256xf32>, vector<80x256xf32> -> vector<80x256xf32>
    %c0_7 = arith.constant 0 : index
    %c0_8 = arith.constant 0 : index
    %10 = vector.load %arg4[%c0_7, %c0_8] : memref<80x80xf32, #tpu.memory_space<vmem>>, vector<80x80xf32>
    %cst_9 = arith.constant dense<0.000000e+00> : vector<80x256xf32>
    %11 = tpu.matmul %10, %9, %cst_9 {dimension_numbers = #tpu.dot_dimension_numbers<[1], [0], [0], [1], [0, 0, 1, 1], [], []>} : vector<80x80xf32>, vector<80x256xf32>, vector<80x256xf32> -> vector<80x256xf32>
    %12 = vector.extract_strided_slice %11 {offsets = [0, 0], sizes = [16, 256], strides = [1, 1]} : vector<80x256xf32> to vector<16x256xf32>
    %13 = vector.extract_strided_slice %11 {offsets = [16, 0], sizes = [16, 256], strides = [1, 1]} : vector<80x256xf32> to vector<16x256xf32>
    %14 = vector.extract_strided_slice %11 {offsets = [32, 0], sizes = [16, 256], strides = [1, 1]} : vector<80x256xf32> to vector<16x256xf32>
    %15 = vector.extract_strided_slice %11 {offsets = [48, 0], sizes = [16, 256], strides = [1, 1]} : vector<80x256xf32> to vector<16x256xf32>
    %16 = vector.extract_strided_slice %11 {offsets = [64, 0], sizes = [16, 256], strides = [1, 1]} : vector<80x256xf32> to vector<16x256xf32>
    %17 = arith.mulf %12, %13 : vector<16x256xf32>
    %cst_10 = arith.constant 0.00137174211 : f32
    %18 = vector.broadcast %cst_10 : f32 to vector<16x256xf32>
    %19 = arith.mulf %17, %18 : vector<16x256xf32>
    %20 = arith.subf %16, %19 : vector<16x256xf32>
    %21 = arith.mulf %12, %12 : vector<16x256xf32>
    %cst_11 = arith.constant 0.00137174211 : f32
    %22 = vector.broadcast %cst_11 : f32 to vector<16x256xf32>
    %23 = arith.mulf %21, %22 : vector<16x256xf32>
    %24 = arith.subf %14, %23 : vector<16x256xf32>
    %25 = arith.mulf %13, %13 : vector<16x256xf32>
    %cst_12 = arith.constant 0.00137174211 : f32
    %26 = vector.broadcast %cst_12 : f32 to vector<16x256xf32>
    %27 = arith.mulf %25, %26 : vector<16x256xf32>
    %28 = arith.subf %15, %27 : vector<16x256xf32>
    %29 = arith.mulf %24, %28 : vector<16x256xf32>
    %cst_13 = arith.constant 9.99999974E-6 : f32
    %30 = vector.broadcast %cst_13 : f32 to vector<16x256xf32>
    %31 = arith.addf %29, %30 : vector<16x256xf32>
    %32 = tpu.reciprocal %31 {approx = true} : vector<16x256xf32> -> vector<16x256xf32>
    %33 = arith.mulf %31, %32 : vector<16x256xf32>
    %cst_14 = arith.constant 2.000000e+00 : f32
    %34 = vector.broadcast %cst_14 : f32 to vector<16x256xf32>
    %35 = arith.subf %34, %33 : vector<16x256xf32>
    %36 = arith.mulf %32, %35 : vector<16x256xf32>
    %37 = arith.mulf %20, %20 : vector<16x256xf32>
    %38 = arith.mulf %37, %36 : vector<16x256xf32>
    %cst_15 = arith.constant 0.000000e+00 : f32
    %39 = vector.broadcast %cst_15 : f32 to vector<16x256xf32>
    %40 = arith.subf %39, %38 : vector<16x256xf32>
    %c0_16 = arith.constant 0 : index
    %c0_17 = arith.constant 0 : index
    %c0_18 = arith.constant 0 : index
    %41 = vector.load %arg5[%c0_16, %c0_17, %c0_18] : memref<1x16x256xf32, #tpu.memory_space<vmem>>, vector<1x16x256xf32>
    %42 = vector.shape_cast %41 : vector<1x16x256xf32> to vector<16x256xf32>
    %43 = vector.shape_cast %40 : vector<16x256xf32> to vector<1x16x256xf32>
    tpu.vector_store %arg5[%c0_16, %c0_17, %c0_18], %43 {strides = array<i32>} : memref<1x16x256xf32, #tpu.memory_space<vmem>>, vector<1x16x256xf32>,
    %44 = vector.shape_cast %38 : vector<16x256xf32> to vector<1x16x256xf32>
    %cst_19 = arith.constant dense<0.000000e+00> : vector<1xf32>
    %45 = vector.multi_reduction <add>, %44, %cst_19 [1, 2] : vector<1x16x256xf32> to vector<1xf32>
    %46 = vector.shape_cast %45 : vector<1xf32> to vector<1x1x1xf32>
    %47 = vector.extract %46[0, 0, 0] : f32 from vector<1x1x1xf32>
    %48 = vector.broadcast %47 : f32 to vector<1x1xf32>
    %c0_20 = arith.constant 0 : index
    %c0_21 = arith.constant 0 : index
    %c0_22 = arith.constant 0 : index
    %49 = vector.load %arg6[%c0_20, %c0_21, %c0_22] : memref<1x1x1xf32, #tpu.memory_space<vmem>>, vector<1x1x1xf32>
    %50 = vector.shape_cast %49 : vector<1x1x1xf32> to vector<1x1xf32>
    %51 = vector.shape_cast %48 : vector<1x1xf32> to vector<1x1x1xf32>
    tpu.vector_store %arg6[%c0_20, %c0_21, %c0_22], %51 {strides = array<i32>} : memref<1x1x1xf32, #tpu.memory_space<vmem>>, vector<1x1x1xf32>,
    return
  }
  func.func @transform_0(%arg0: i32) -> (i32, i32, i32) {
    %c0_i32 = arith.constant 0 : i32
    %c0_i32_0 = arith.constant 0 : i32
    %c0_i32_1 = arith.constant 0 : i32
    return %arg0, %c0_i32, %c0_i32_0 : i32, i32, i32
  }
  func.func @transform_1(%arg0: i32) -> (i32, i32, i32) {
    %c0_i32 = arith.constant 0 : i32
    %c0_i32_0 = arith.constant 0 : i32
    %c0_i32_1 = arith.constant 0 : i32
    return %arg0, %c0_i32, %c0_i32_0 : i32, i32, i32
  }
  func.func @transform_2(%arg0: i32) -> (i32, i32) {
    %c0_i32 = arith.constant 0 : i32
    %c0_i32_0 = arith.constant 0 : i32
    %c0_i32_1 = arith.constant 0 : i32
    return %c0_i32, %c0_i32_0 : i32, i32
  }
  func.func @transform_3(%arg0: i32) -> (i32, i32) {
    %c0_i32 = arith.constant 0 : i32
    %c0_i32_0 = arith.constant 0 : i32
    %c0_i32_1 = arith.constant 0 : i32
    return %c0_i32, %c0_i32_0 : i32, i32
  }
  func.func @transform_4(%arg0: i32) -> (i32, i32, i32) {
    %c0_i32 = arith.constant 0 : i32
    %c0_i32_0 = arith.constant 0 : i32
    %c0_i32_1 = arith.constant 0 : i32
    return %arg0, %c0_i32, %c0_i32_0 : i32, i32, i32
  }
  func.func @transform_5(%arg0: i32) -> (i32, i32, i32) {
    %c0_i32 = arith.constant 0 : i32
    %c0_i32_0 = arith.constant 0 : i32
    %c0_i32_1 = arith.constant 0 : i32
    return %arg0, %c0_i32, %c0_i32_0 : i32, i32, i32
  }
}

</mosaic_0001>

<bundles_post_ra>
// kernel: tpu_custom_call.1
= control target key start
LH: loop header
LB: loop body
LE: loop exit
PB: predicated region body
PF: predicated region fallthrough
CT: control target
= control target key end

     0   :  { %s1724_s0 = inlined_call_operand.hbm [shape: f32[2,16,256], index: 0, kind: input, shape index: {}]   ;;  %s1725_s1 = inlined_call_operand.hbm [shape: f32[2,16,256], index: 1, kind: input, shape index: {}]   ;;  %s1726_s2 = inlined_call_operand.hbm [shape: f32[256,256], index: 2, kind: input, shape index: {}]   ;;  %s1727_s3 = inlined_call_operand.hbm [shape: f32[80,80], index: 3, kind: input, shape index: {}]   ;;  %s1728_s4 = inlined_call_operand.hbm [shape: f32[2,16,256], index: 4, kind: output, shape index: {0}]   ;;  %s1729_s5 = inlined_call_operand.vmem [shape: f32[2,1,1], index: 5, kind: output, shape index: {1}]  }
   0x1   :  { %1737 = sst [smem:[#allocation16_spill]] %s1724_s0 }
   0x2   :  { %1738 = sst [smem:[#allocation17_spill]] %s1726_s2 }
   0x3   :  { %11 = vsyncpa [#allocation3], 0 }
   0x4   :  { %13 = vsyncpa [#allocation3 + $0x1], 0 }
   0x5   :  { %14 = vsyncpa [#allocation6], 0 }
   0x6   :  { %16 = vsyncpa [#allocation6 + $0x1], 0 }
   0x7   :  { %17 = vsyncpa [#allocation9], 0 }
   0x8   :  { %18 = vsyncpa [#allocation4], 0 }
   0x9   :  { %20 = vsyncpa [#allocation4 + $0x1], 0  ;;  %s1387_s18 = smov 0   ;;  %s1389_s19 = smov 0  }
   0xa   :  { %s1391_s20 = smov 0   ;;  %s1393_s21 = smov 0  }
   0xb LB: > { %s1408_s22 = sadd.s32 4294967295, %s1343_s21   ;;  %s941_s23 = sadd.s32 4294967294, %s1343_s21   ;;  %s1343_s21 = sphi %s1393_s21, %s1761_s21   ;;  %s1339_s20 = sphi %s1391_s20, %s1760_s20   ;;  %s1335_s19 = sphi %s1389_s19, %s1759_s19   ;;  %s1331_s18 = sphi %s1387_s18, %s1758_s18  }
   0xc   : > { %p46_p0 = scmp.ne.s32.totalorder %s1335_s19, %s1331_s18  ;;  %p1730_p1 = scmp.eq.s32.totalorder %s1408_s22, 0 }
   0xd   : > { %p144_p3 = scmp.eq.s32.totalorder %s941_s23, 1  ;;  %p942_p5 = scmp.ge.s32.totalorder %s1343_s21, 1 }
   0xe   : > { %p1417_p4 = por %p1730_p1, %p46_p0  ;;  %p177_p7 = scmp.lt.s32.totalorder %s1343_s21, 3 }
   0xf   : > { %p1422_p6 = por %p144_p3, %p46_p0  ;;  %s1345_s27 = smov [#allocation7]  }
  0x10   : > { %s1739_s24 = scalar_select %p1417_p4, 1, 0 }
  0x11   : > { %s1740_s25 = scalar_select %p1422_p6, 1, 0 }
  0x12   : > { %p1427_p8 = pnand %p942_p5, %p177_p7  ;;  %s189_s28 = sshll.u32 %s1345_s27, 4  ;;  %s1431_s28 = int_to_ptr.vmem [resolvable:$true] %s189_s28 }
  0x13   : > { %s1346_s30 = smov [#allocation8]   ;;  %s1743_s2 = sld [smem:[#allocation17_spill]] }
  0x14   : > { %p1076_p9 = pneg %p1427_p8  ;;  %s202_s6 = sshll.u32 %s1346_s30, 4  ;;  %s1442_s6 = int_to_ptr.vmem [resolvable:$true] %s202_s6 }
  0x16   : > { %p1438_p11 = pnand %p1076_p9, %p1730_p1 }
  0x18   : > { %p1151_p13 = pneg %p1438_p11 }
  0x19   : > { %s1149_s9 = scalar_lea.hbm %s1743_s2, 8192 }
  0x1a   : > { %p1150_p12 = scmp.ne.s32.totalorder %s1743_s2, %s1149_s9  ;;  %p1156_p5 = scmp.lt.u32.totalorder %s1149_s9, %s1743_s2 }
  0x1c   : > { %p1152_p0 = pnand %p1151_p13, %p1150_p12 }
  0x1e   : > { %p1153_p3 = pneg %p1152_p0 }
  0x20   : > { %p1158_p7 = pnand %p1156_p5, %p1153_p3 }
  0x22   : > { %1161 = shalt.err (!%p1158_p7)
}
  0x23   : > { %s1162_s14 = scalar_lea.vmem %s1431_s28, 8192  ;;  %p1170_p2 = scmp.lt.s32.totalorder %s1431_s28, %s1431_s28 }
  0x24   : > { %p1163_p9 = scmp.ne.s32.totalorder %s1431_s28, %s1162_s14  ;;  %p1171_p12 = scmp.lt.s32.totalorder %s1162_s14, %s1162_s14 }
  0x26   : > { %p1165_p10 = pnand %p1163_p9, %p1151_p13  ;;  %p1172_p0 = por %p1171_p12, %p1170_p2 }
  0x28   : > { %p1166_p1 = pneg %p1165_p10 }
  0x2a   : > { %p1173_p6 = pnand %p1172_p0, %p1166_p1 }
  0x2c   : > { %1176 = shalt.err (!%p1173_p6)
}
  0x2d   : > { %s1731_s15 = smov 256   ;;  %s1733_s16 = smov 16  }
  0x2e   : > { %1079 = dma.hbm_to_vmem [thread:$0]  (!%p1438_p11), %s1743_s2, 8192, %s1431_s28, [#allocation6], %s1731_s15, %s1731_s15, %s1733_s16  }
  0x2f   : > { %s1177_s7 = scalar_lea.hbm %s1727_s3, 1280 }
  0x30   : > { %p1178_p1 = scmp.ne.s32.totalorder %s1727_s3, %s1177_s7  ;;  %p1184_p10 = scmp.lt.u32.totalorder %s1177_s7, %s1727_s3 }
  0x32   : > { %p1180_p2 = pnand %p1178_p1, %p1151_p13 }
  0x34   : > { %p1181_p6 = pneg %p1180_p2 }
  0x36   : > { %p1186_p3 = pnand %p1184_p10, %p1181_p6 }
  0x38   : > { %1189 = shalt.err (!%p1186_p3)
}
  0x39   : > { %s1190_s28 = scalar_lea.vmem %s1442_s6, 1280  ;;  %p1198_p12 = scmp.lt.s32.totalorder %s1442_s6, %s1442_s6 }
  0x3a   : > { %p1191_p5 = scmp.ne.s32.totalorder %s1442_s6, %s1190_s28  ;;  %p1199_p0 = scmp.lt.s32.totalorder %s1190_s28, %s1190_s28 }
  0x3c   : > { %p1193_p7 = pnand %p1191_p5, %p1151_p13  ;;  %p1200_p1 = por %p1199_p0, %p1198_p12 }
  0x3e   : > { %p1194_p9 = pneg %p1193_p7 }
  0x40   : > { %p1201_p2 = pnand %p1200_p1, %p1194_p9 }
  0x42   : > { %1204 = shalt.err (!%p1201_p2)
}
  0x43   : > { %s1349_s12 = smov 128   ;;  %s1350_s13 = smov 8  }
  0x44   : > { %1082 = dma.hbm_to_vmem [thread:$0]  (!%p1438_p11), %s1727_s3, 1280, %s1442_s6, [#allocation9], %s1349_s12, %s1349_s12, %s1350_s13  }
  0x45   : > { %s1500_s23 = sadd.s32 1, %s1343_s21   ;;  %s33_s30 = sadd.s32 1, %s1339_s20 }
  0x46   : > { %s30_s27 = ssub.s32 %s1343_s21, %s1500_s23  ;;  %p40_p6 = scmp.ne.s32.totalorder %s1339_s20, %s1335_s19 }
  0x47   : > { %p31_p13 = scmp.eq.s32.totalorder %s30_s27, 0  ;;  %p41_p10 = scmp.eq.s32.totalorder %s1343_s21, 0 }
  0x48   : > { %p1744_p5 = scmp.eq.s32.totalorder %s1408_s22, 1  ;;  %p1096_p9 = scmp.lt.s32.totalorder %s1343_s21, 2 }
  0x49   : > { %s1509_s7 = scalar_select %p31_p13, %s1339_s20, %s33_s30  }
  0x4a   : > { %p42_p3 = por %p41_p10, %p40_p6  ;;  %p1513_p7 = por %p1744_p5, %p40_p6 }
  0x4b   : > { %s216_s29 = sand.u32 1, %s1339_s20   ;;  %s973_s6 = sshll.u32 %s1343_s21, 9 }
  0x4c   : > { %s1745_s8 = scalar_select %p1513_p7, 1, 0 }
  0x4d   : > { %s946_s9 = sshll.u32 %s216_s29, 5  ;;  %s1746_s0 = sld [smem:[#allocation16_spill]] }
  0x4e   : > { %s220_s12 = scalar_lea.vmem [#allocation2], %s946_s9  ;;  %p1527_p11 = pnand %p1096_p9, %p42_p3 }
  0x4f   : > { %s227_s13 = sshll.u32 %s220_s12, 4  ;;  %s1534_s30 = scalar_lea.hbm %s1725_s1, %s973_s6  ;;  %s1525_s13 = int_to_ptr.vmem [resolvable:$true] %s227_s13 }
  0x50   : > { %s241_s10 = scalar_lea.vmem [#allocation5], %s946_s9  ;;  %s1538_s15 = scalar_lea.sflag [#allocation3], %s216_s29 }
  0x51   : > { %s1536_s11 = sshll.u32 %s241_s10, 4  ;;  %p1207_p0 = pneg %p1527_p11  ;;  %s1570_s11 = int_to_ptr.vmem [resolvable:$true] %s1536_s11 }
  0x53   : > { %s1523_s28 = scalar_lea.hbm %s1746_s0, %s973_s6  ;;  %s1210_s17 = scalar_lea.hbm %s1746_s0, 1024 }
  0x54   : > { %s1205_s12 = scalar_lea.hbm %s1523_s28, 512  ;;  %p1211_p13 = scmp.lt.u32.totalorder %s1523_s28, %s1746_s0 }
  0x55   : > { %p1206_p12 = scmp.ne.s32.totalorder %s1523_s28, %s1205_s12  ;;  %p1212_p6 = scmp.lt.u32.totalorder %s1210_s17, %s1205_s12 }
  0x56   : > { %p1214_p3 = scmp.lt.u32.totalorder %s1205_s12, %s1523_s28 }
  0x57   : > { %p1208_p1 = pnand %p1207_p0, %p1206_p12  ;;  %p1213_p10 = por %p1212_p6, %p1211_p13 }
  0x59   : > { %p1209_p2 = pneg %p1208_p1  ;;  %p1215_p5 = por %p1214_p3, %p1213_p10 }
  0x5b   : > { %p1216_p9 = pnand %p1215_p5, %p1209_p2 }
  0x5d   : > { %1219 = shalt.err (!%p1216_p9)
}
  0x5e   : > { %s1220_s29 = scalar_lea.vmem %s1525_s13, 512  ;;  %s1351_s2 = smov [#allocation2]  }
  0x5f   : > { %p1221_p12 = scmp.ne.s32.totalorder %s1525_s13, %s1220_s29  ;;  %s1225_s16 = sshll.u32 %s1351_s2, 4  ;;  %s1226_s16 = int_to_ptr.vmem [resolvable:$false] %s1225_s16 }
  0x60   : > { %s1227_s9 = scalar_lea.vmem %s1226_s16, 1024  ;;  %p1228_p4 = scmp.lt.s32.totalorder %s1525_s13, %s1226_s16 }
  0x61   : > { %p1223_p1 = pnand %p1221_p12, %p1207_p0  ;;  %p1229_p13 = scmp.lt.s32.totalorder %s1227_s9, %s1220_s29 }
  0x63   : > { %p1224_p7 = pneg %p1223_p1  ;;  %p1230_p6 = por %p1229_p13, %p1228_p4 }
  0x65   : > { %p1231_p10 = pnand %p1230_p6, %p1224_p7 }
  0x67   : > { %1234 = shalt.err (!%p1231_p10)
}
  0x68   : > { %s1748_s10 = smov 16   ;;  %s1749_s12 = smov 256  }
  0x69   : > { %1086 = dma.hbm_to_vmem [thread:$0]  (!%p1527_p11), %s1523_s28, 512, %s1525_s13, %s1538_s15, %s1749_s12, %s1749_s12, %s1748_s10  }
  0x6a   : > { %s237_s17 = sand.u32 1, %s1343_s21   ;;  %s1235_s6 = scalar_lea.hbm %s1534_s30, 512 }
  0x6b   : > { %s1573_s27 = scalar_lea.sflag [#allocation6], %s237_s17  ;;  %p1236_p4 = scmp.ne.s32.totalorder %s1534_s30, %s1235_s6 }
  0x6c   : > { %s1240_s16 = scalar_lea.hbm %s1725_s1, 1024  ;;  %p1241_p3 = scmp.lt.u32.totalorder %s1534_s30, %s1725_s1 }
  0x6d   : > { %p1238_p7 = pnand %p1236_p4, %p1207_p0  ;;  %p1242_p5 = scmp.lt.u32.totalorder %s1240_s16, %s1235_s6 }
  0x6e   : > { %p1244_p12 = scmp.lt.u32.totalorder %s1235_s6, %s1534_s30 }
  0x6f   : > { %p1239_p2 = pneg %p1238_p7  ;;  %p1243_p9 = por %p1242_p5, %p1241_p3 }
  0x71   : > { %p1245_p1 = por %p1244_p12, %p1243_p9 }
  0x73   : > { %p1246_p13 = pnand %p1245_p1, %p1239_p2 }
  0x75   : > { %1249 = shalt.err (!%p1246_p13)
}
  0x76   : > { %s1250_s15 = scalar_lea.vmem %s1570_s11, 512  ;;  %s1352_s28 = smov [#allocation5]  }
  0x77   : > { %p1251_p6 = scmp.ne.s32.totalorder %s1570_s11, %s1250_s15  ;;  %s1255_s13 = sshll.u32 %s1352_s28, 4  ;;  %s1256_s13 = int_to_ptr.vmem [resolvable:$false] %s1255_s13 }
  0x78   : > { %s1257_s0 = scalar_lea.vmem %s1256_s13, 1024  ;;  %p1258_p7 = scmp.lt.s32.totalorder %s1570_s11, %s1256_s13 }
  0x79   : > { %p1253_p10 = pnand %p1251_p6, %p1207_p0  ;;  %p1259_p3 = scmp.lt.s32.totalorder %s1257_s0, %s1250_s15 }
  0x7b   : > { %p1254_p4 = pneg %p1253_p10  ;;  %p1260_p5 = por %p1259_p3, %p1258_p7 }
  0x7d   : > { %p1261_p9 = pnand %p1260_p5, %p1254_p4 }
  0x7f   : > { %1264 = shalt.err (!%p1261_p9)
}
  0x80   : > { %1089 = dma.hbm_to_vmem [thread:$0]  (!%p1527_p11), %s1534_s30, 512, %s1570_s11, %s1573_s27, %s1749_s12, %s1749_s12, %s1748_s10  }
  0x81   : > { %260 = sbr.rel (%p1427_p8) target bundleno = 943 (0x3af), region = 36  ;;  %s1605_s17 = sand.u32 (!%p1427_p8), 1, %s1335_s19  }
  0x82   : > { %s1608_s6 = sshll.u32 (!%p1427_p8), %s1605_s17, 5  ;;  %s263_s14 = scalar_lea.sflag (!%p1427_p8), [#allocation3], %s1605_s17 }
  0x83   : > { %s1612_s29 = scalar_lea.vmem (!%p1427_p8), [#allocation2], %s1608_s6  ;;  %p1750_p0 = scmp.ne.s32.totalorder (!%p1427_p8), %s1739_s24, 0 }
  0x88   : > { %1310 = dma.done.wait (%p1750_p0), %s263_s14, 512  }
  0x89   : > { %1312 = vsyncadd (%p1750_p0), %s263_s14, 4294966784  ;;  %s271_s26 = sand.u32 1, %s1408_s22   ;;  %s1620_s11 = scalar_lea.vmem [#allocation5], %s1608_s6 }
  0x8a   : > { %s272_s30 = scalar_lea.sflag [#allocation6], %s271_s26 }
  0x8b   : > { %1314 = dma.done.wait (%p1750_p0), %s272_s30, 512  }
  0x8c   : > { %1316 = vsyncadd (%p1750_p0), %s272_s30, 4294966784  ;;  %p1751_p8 = scmp.eq.s32.totalorder %s1408_s22, 0 }
  0x8e   : > { %1318 = dma.done.wait (%p1751_p8), [#allocation6], 8192   ;;  %p1752_p11 = pmov %p1751_p8 }
  0x8f   : > { %p1753_p2 = pmov %p1751_p8 }
  0x90   : > { %1320 = vsyncadd (%p1752_p11), [#allocation6], 4294959104 }
  0x91   : > { %1322 = dma.done.wait (%p1753_p2), [#allocation9], 1280   ;;  %p1754_p12 = pmov %p1753_p2 }
  0x92   : > { %v342_v0 = vld [vmem:[#allocation7 + $0x8] sm:$0xff]  ;;  %v344_v1 = vld [vmem:[#allocation7 + $0x18] sm:$0xff]  ;;  %v341_v2 = vld [vmem:[#allocation7] sm:$0xff]  ;;  %vm540_vm0 = vcmask 654336   ;;  %s312_s24 = scalar_lea.vmem [#allocation10], %s1608_s6  ;;  %s975_s12 = sshll.u32 %s1408_s22, 9 }
  0x93   : > { %1324 = vsyncadd (%p1754_p12), [#allocation9], 4294966016  ;;  %v976_v3 = vpack.c.bf16 %v344_v1, %v342_v0  ;;  %v343_v4 = vld [vmem:[#allocation7 + $0x10] sm:$0xff]  ;;  %v346_v5 = vld [vmem:[#allocation7 + $0x28] sm:$0xff]  ;;  %s804_s10 = sshll.u32 %s312_s24, 4  ;;  %s1675_s16 = scalar_lea.hbm %s1728_s4, %s975_s12  ;;  %s1669_s10 = int_to_ptr.vmem [resolvable:$true] %s804_s10 }
  0x94   : > { %v348_v6 = vld [vmem:[#allocation7 + $0x38] sm:$0xff]  ;;  %v978_v7 = vpack.c.bf16 %v343_v4, %v341_v2  ;;  %v345_v9 = vld [vmem:[#allocation7 + $0x20] sm:$0xff]  ;;  %v347_v10 = vld [vmem:[#allocation7 + $0x30] sm:$0xff]  ;;  %s788_s9 = scalar_lea.sflag [#allocation4], %s1605_s17  ;;  %s1265_s15 = scalar_lea.vmem %s1669_s10, 512 }
  0x95   : > { %v980_v8 = vpack.c.bf16 %v348_v6, %v346_v5  ;;  %v350_v11 = vld [vmem:[#allocation7 + $0x48] sm:$0xff]  ;;  %977 = vmatprep.subr.bf16.mxu0 %v976_v3  ;;  %v352_v12 = vld [vmem:[#allocation7 + $0x58] sm:$0xff]  ;;  %v982_v13 = vpack.c.bf16 %v347_v10, %v345_v9  ;;  %v349_v15 = vld [vmem:[#allocation7 + $0x40] sm:$0xff]  ;;  %p1266_p1 = scmp.ne.s32.totalorder %s1669_s10, %s1265_s15  ;;  %p1755_p13 = scmp.ne.s32.totalorder %s1745_s8, 0 }
  0x96   : > { %979 = vmatpush1.bf16.msra.mxu0 %v978_v7  ;;  %v984_v14 = vpack.c.bf16 %v352_v12, %v350_v11  ;;  %v351_v16 = vld [vmem:[#allocation7 + $0x50] sm:$0xff]  ;;  %v354_v17 = vld [vmem:[#allocation7 + $0x68] sm:$0xff]  ;;  %v356_v18 = vld [vmem:[#allocation7 + $0x78] sm:$0xff]  ;;  %s1354_s28 = smov [#allocation10]  }
  0x97   : > { %981 = vmatprep.subr.bf16.mxu0 %v980_v8  ;;  %v986_v19 = vpack.c.bf16 %v351_v16, %v349_v15  ;;  %v988_v20 = vpack.c.bf16 %v356_v18, %v354_v17  ;;  %v353_v21 = vld [vmem:[#allocation7 + $0x60] sm:$0xff]  ;;  %v355_v22 = vld [vmem:[#allocation7 + $0x70] sm:$0xff]  ;;  %v358_v23 = vld [vmem:[#allocation7 + $0x88] sm:$0xff]  ;;  %p1267_p6 = pnand %p1266_p1, %p1755_p13  ;;  %s1269_s13 = sshll.u32 %s1354_s28, 4  ;;  %s1270_s13 = int_to_ptr.vmem [resolvable:$false] %s1269_s13 }
  0x98   : > { %v360_v24 = vld [vmem:[#allocation7 + $0x98] sm:$0xff]  ;;  %v990_v25 = vpack.c.bf16 %v355_v22, %v353_v21  ;;  %v357_v27 = vld [vmem:[#allocation7 + $0x80] sm:$0xff]  ;;  %v359_v28 = vld [vmem:[#allocation7 + $0x90] sm:$0xff]  ;;  %s1271_s0 = scalar_lea.vmem %s1270_s13, 1024  ;;  %p1272_p4 = scmp.lt.s32.totalorder %s1669_s10, %s1270_s13 }
  0x99   : > { %v992_v26 = vpack.c.bf16 %v360_v24, %v358_v23  ;;  %v362_v29 = vld [vmem:[#allocation7 + $0xa8] sm:$0xff]  ;;  %v364_v30 = vld [vmem:[#allocation7 + $0xb8] sm:$0xff]  ;;  %v994_v31 = vpack.c.bf16 %v359_v28, %v357_v27  ;;  %v361_v33 = vld [vmem:[#allocation7 + $0xa0] sm:$0xff]  ;;  %p1268_p10 = pneg %p1267_p6  ;;  %p1273_p7 = scmp.lt.s32.totalorder %s1271_s0, %s1265_s15 }
  0x9a   : > { %983 = vmatpush1.bf16.msra.mxu0 %v982_v13  ;;  %v996_v32 = vpack.c.bf16 %v364_v30, %v362_v29  ;;  %v363_v34 = vld [vmem:[#allocation7 + $0xb0] sm:$0xff]  ;;  %v366_v35 = vld [vmem:[#allocation7 + $0xc8] sm:$0xff]  ;;  %v368_v36 = vld [vmem:[#allocation7 + $0xd8] sm:$0xff] }
  0x9b   : > { %985 = vmatprep.subr.bf16.mxu0 %v984_v14  ;;  %v998_v37 = vpack.c.bf16 %v363_v34, %v361_v33  ;;  %v1000_v38 = vpack.c.bf16 %v368_v36, %v366_v35  ;;  %v365_v39 = vld [vmem:[#allocation7 + $0xc0] sm:$0xff]  ;;  %v367_v40 = vld [vmem:[#allocation7 + $0xd0] sm:$0xff]  ;;  %v1635_v41 = vld [vmem:[%s1612_s29 + $0x8] sm:$0xff]  ;;  %p1274_p3 = por %p1273_p7, %p1272_p4 }
  0x9c   : > { %v370_v42 = vld [vmem:[#allocation7 + $0xe8] sm:$0xff]  ;;  %v372_v43 = vld [vmem:[#allocation7 + $0xf8] sm:$0xff]  ;;  %469 = vmatprep.mubr.f32.mxu0 %v1635_v41  ;;  %v1002_v44 = vpack.c.bf16 %v367_v40, %v365_v39  ;;  %v369_v46 = vld [vmem:[#allocation7 + $0xe0] sm:$0xff]  ;;  %v330_v40 = vmul.f32 %v1635_v41, %v1635_v41 }
  0x9d   : > { %v1004_v45 = vpack.c.bf16 %v372_v43, %v370_v42  ;;  %v371_v47 = vld [vmem:[#allocation7 + $0xf0] sm:$0xff]  ;;  %v374_v48 = vld [vmem:[#allocation7 + $0x108] sm:$0xff]  ;;  %v376_v49 = vld [vmem:[#allocation7 + $0x118] sm:$0xff]  ;;  %p1275_p5 = pnand %p1274_p3, %p1268_p10 }
  0x9e   : > { %987 = vmatpush1.bf16.msra.mxu0 %v986_v19  ;;  %v1006_v50 = vpack.c.bf16 %v371_v47, %v369_v46  ;;  %v1008_v51 = vpack.c.bf16 %v376_v49, %v374_v48  ;;  %v373_v52 = vld [vmem:[#allocation7 + $0x100] sm:$0xff]  ;;  %v375_v53 = vld [vmem:[#allocation7 + $0x110] sm:$0xff]  ;;  %v378_v54 = vld [vmem:[#allocation7 + $0x128] sm:$0xff] }
  0x9f   : > { %989 = vmatprep.subr.bf16.mxu0 %v988_v20  ;;  %v380_v55 = vld [vmem:[#allocation7 + $0x138] sm:$0xff]  ;;  %v1010_v56 = vpack.c.bf16 %v375_v53, %v373_v52  ;;  %v377_v58 = vld [vmem:[#allocation7 + $0x120] sm:$0xff]  ;;  %v379_v59 = vld [vmem:[#allocation7 + $0x130] sm:$0xff]  ;;  %v1353_v53 = vmov 0.0  }
  0xa0   : > { %v1012_v57 = vpack.c.bf16 %v380_v55, %v378_v54  ;;  %v382_v60 = vld [vmem:[#allocation7 + $0x148] sm:$0xff]  ;;  %v384_v61 = vld [vmem:[#allocation7 + $0x158] sm:$0xff]  ;;  %v1014_v62 = vpack.c.bf16 %v379_v59, %v377_v58  ;;  %v381_v0 = vld [vmem:[#allocation7 + $0x140] sm:$0xff]  ;;  %635 = vmatprep.mubr.f32.mxu1 %v1353_v53 }
  0xa1   : > { %v1016_v63 = vpack.c.bf16 %v384_v61, %v382_v60  ;;  %v383_v1 = vld [vmem:[#allocation7 + $0x150] sm:$0xff]  ;;  %v386_v2 = vld [vmem:[#allocation7 + $0x168] sm:$0xff]  ;;  %v388_v3 = vld [vmem:[#allocation7 + $0x178] sm:$0xff] }
  0xa2   : > { %991 = vmatpush1.bf16.msra.mxu0 %v990_v25  ;;  %v1018_v4 = vpack.c.bf16 %v383_v1, %v381_v0  ;;  %v1020_v5 = vpack.c.bf16 %v388_v3, %v386_v2  ;;  %v385_v6 = vld [vmem:[#allocation7 + $0x160] sm:$0xff]  ;;  %v387_v7 = vld [vmem:[#allocation7 + $0x170] sm:$0xff]  ;;  %v390_v8 = vld [vmem:[#allocation7 + $0x188] sm:$0xff] }
  0xa3   : > { %993 = vmatprep.subr.bf16.mxu0 %v992_v26  ;;  %v392_v9 = vld [vmem:[#allocation7 + $0x198] sm:$0xff]  ;;  %v1022_v10 = vpack.c.bf16 %v387_v7, %v385_v6  ;;  %v389_v12 = vld [vmem:[#allocation7 + $0x180] sm:$0xff]  ;;  %v391_v13 = vld [vmem:[#allocation7 + $0x190] sm:$0xff] }
  0xa4   : > { %v1024_v11 = vpack.c.bf16 %v392_v9, %v390_v8  ;;  %v394_v14 = vld [vmem:[#allocation7 + $0x1a8] sm:$0xff]  ;;  %v396_v15 = vld [vmem:[#allocation7 + $0x1b8] sm:$0xff]  ;;  %v1026_v16 = vpack.c.bf16 %v391_v13, %v389_v12  ;;  %v393_v18 = vld [vmem:[#allocation7 + $0x1a0] sm:$0xff] }
  0xa5   : > { %v1028_v17 = vpack.c.bf16 %v396_v15, %v394_v14  ;;  %v395_v19 = vld [vmem:[#allocation7 + $0x1b0] sm:$0xff]  ;;  %v398_v20 = vld [vmem:[#allocation7 + $0x1c8] sm:$0xff]  ;;  %v400_v21 = vld [vmem:[#allocation7 + $0x1d8] sm:$0xff] }
  0xa6   : > { %995 = vmatpush1.bf16.msra.mxu0 %v994_v31  ;;  %v1030_v22 = vpack.c.bf16 %v395_v19, %v393_v18  ;;  %v1032_v23 = vpack.c.bf16 %v400_v21, %v398_v20  ;;  %v397_v24 = vld [vmem:[#allocation7 + $0x1c0] sm:$0xff]  ;;  %v399_v25 = vld [vmem:[#allocation7 + $0x1d0] sm:$0xff]  ;;  %v402_v26 = vld [vmem:[#allocation7 + $0x1e8] sm:$0xff] }
  0xa7   : > { %997 = vmatprep.subr.bf16.mxu0 %v996_v32  ;;  %v404_v27 = vld [vmem:[#allocation7 + $0x1f8] sm:$0xff]  ;;  %v1034_v28 = vpack.c.bf16 %v399_v25, %v397_v24  ;;  %v401_v30 = vld [vmem:[#allocation7 + $0x1e0] sm:$0xff]  ;;  %v403_v31 = vld [vmem:[#allocation7 + $0x1f0] sm:$0xff] }
  0xa8   : > { %v1036_v29 = vpack.c.bf16 %v404_v27, %v402_v26  ;;  %v1038_v32 = vpack.c.bf16 %v403_v31, %v401_v30  ;;  %v321_v33 = vld [vmem:[%s1612_s29] sm:$0xff]  ;;  %v324_v34 = vld [vmem:[%s1612_s29 + $0x18] sm:$0xff]  ;;  %v323_v35 = vld [vmem:[%s1612_s29 + $0x10] sm:$0xff] }
  0xa9   : > { %v326_v36 = vld [vmem:[%s1620_s11 + $0x8] sm:$0xff]  ;;  %v327_v39 = vld [vmem:[%s1620_s11 + $0x10] sm:$0xff]  ;;  %v329_v42 = vmul.f32 %v321_v33, %v321_v33  ;;  %v332_v43 = vmul.f32 %v324_v34, %v324_v34  ;;  %v530_v19 = vld [vmem:[#allocation8] sm:$0xff] }
  0xaa   : > { %999 = vmatpush1.bf16.msra.mxu0 %v998_v37  ;;  %v325_v37 = vld [vmem:[%s1620_s11] sm:$0xff]  ;;  %v335_v48 = vmul.f32 %v327_v39, %v327_v39  ;;  %v338_v49 = vmul.f32 %v326_v36, %v1635_v41  ;;  %v339_v52 = vmul.f32 %v327_v39, %v323_v35  ;;  %v531_v20 = vld [vmem:[#allocation8 + $0x8] sm:$0xff]  ;;  %v532_v21 = vld [vmem:[#allocation8 + $0x10] sm:$0xff] }
  0xab   : > { %1001 = vmatprep.subr.bf16.mxu0 %v1000_v38  ;;  %v328_v38 = vld [vmem:[%s1620_s11 + $0x18] sm:$0xff]  ;;  %v333_v46 = vmul.f32 %v325_v37, %v325_v37  ;;  %v535_v24 = vld [vmem:[#allocation8 + $0x28] sm:$0xff]  ;;  %v536_v25 = vld [vmem:[#allocation8 + $0x30] sm:$0xff] }
  0xac   : > { %v336_v47 = vmul.f32 %v328_v38, %v328_v38  ;;  %v537_v26 = vld [vmem:[#allocation8 + $0x38] sm:$0xff]  ;;  %v538_v27 = vld [vmem:[#allocation8 + $0x40] sm:$0xff] }
  0xae   : > { %1003 = vmatpush1.bf16.msra.mxu0 %v1002_v44  ;;  %v331_v44 = vmul.f32 %v323_v35, %v323_v35 }
  0xaf   : > { %1005 = vmatprep.subr.bf16.mxu0 %v1004_v45  ;;  %v334_v45 = vmul.f32 %v326_v36, %v326_v36 }
  0xb2   : > { %1007 = vmatpush1.bf16.msra.mxu0 %v1006_v50  ;;  %v337_v50 = vmul.f32 %v325_v37, %v321_v33 }
  0xb3   : > { %1009 = vmatprep.subr.bf16.mxu0 %v1008_v51  ;;  %v340_v51 = vmul.f32 %v328_v38, %v324_v34 }
  0xb6   : > { %1011 = vmatpush1.bf16.msra.mxu0 %v1010_v56 }
  0xb7   : > { %1013 = vmatprep.subr.bf16.mxu0 %v1012_v57 }
  0xba   : > { %1015 = vmatpush1.bf16.msra.mxu0 %v1014_v62 }
  0xbb   : > { %1017 = vmatprep.subr.bf16.mxu0 %v1016_v63 }
  0xbe   : > { %1019 = vmatpush1.bf16.msra.mxu0 %v1018_v4 }
  0xbf   : > { %1021 = vmatprep.subr.bf16.mxu0 %v1020_v5 }
  0xc2   : > { %1023 = vmatpush1.bf16.msra.mxu0 %v1022_v10 }
  0xc3   : > { %1025 = vmatprep.subr.bf16.mxu0 %v1024_v11 }
  0xc6   : > { %1027 = vmatpush1.bf16.msra.mxu0 %v1026_v16 }
  0xc7   : > { %1029 = vmatprep.subr.bf16.mxu0 %v1028_v17 }
  0xca   : > { %1031 = vmatpush1.bf16.msra.mxu0 %v1030_v22  ;;  %v533_v22 = vld [vmem:[#allocation8 + $0x18] sm:$0xff] }
  0xcb   : > { %1033 = vmatprep.subr.bf16.mxu0 %v1032_v23  ;;  %v534_v23 = vld [vmem:[#allocation8 + $0x20] sm:$0xff] }
  0xce   : > { %1035 = vmatpush1.bf16.msra.mxu0 %v1034_v28  ;;  %v539_v28 = vld [vmem:[#allocation8 + $0x48] sm:$0xff] }
  0xcf   : > { %1037 = vmatprep.subr.bf16.mxu0 %v1036_v29 }
  0xd2   : > { %1039 = vmatpush1.bf16.msra.mxu0 %v1038_v32 }
  0xd5   : > { %470 = vmatmul.mubr.f32.vlgmr.msra.gmra.mrb[0].mxu0 %v321_v33 }
  0xd6   : > { %475 = vmatprep.mubr.f32.mxu0 %v324_v34 }
  0xd9   : > { %476 = vmatmul.mubr.f32.gmra.mrb[2].mxu0 %v323_v35 }
  0xda   : > { %481 = vmatprep.mubr.f32.mxu0 %v326_v36 }
  0xdd   : > { %482 = vmatmul.mubr.f32.gmra.mrb[4].mxu0 %v325_v37 }
  0xde   : > { %487 = vmatprep.mubr.f32.mxu0 %v328_v38 }
  0xe1   : > { %488 = vmatmul.mubr.f32.gmra.mrb[6].mxu0 %v327_v39 }
  0xe2   : > { %493 = vmatprep.mubr.f32.mxu0 %v330_v40 }
  0xe5   : > { %494 = vmatmul.mubr.f32.gmra.mrb[8].mxu0 %v329_v42 }
  0xe6   : > { %499 = vmatprep.mubr.f32.mxu0 %v332_v43 }
  0xe9   : > { %500 = vmatmul.mubr.f32.gmra.mrb[10].mxu0 %v331_v44 }
  0xea   : > { %505 = vmatprep.mubr.f32.mxu0 %v334_v45 }
  0xed   : > { %506 = vmatmul.mubr.f32.gmra.mrb[12].mxu0 %v333_v46 }
  0xee   : > { %511 = vmatprep.mubr.f32.mxu0 %v336_v47 }
  0xf1   : > { %512 = vmatmul.mubr.f32.gmra.mrb[14].mxu0 %v335_v48 }
  0xf2   : > { %517 = vmatprep.mubr.f32.mxu0 %v338_v49 }
  0xf5   : > { %518 = vmatmul.mubr.f32.gmra.mrb[16].mxu0 %v337_v50 }
  0xf6   : > { %523 = vmatprep.mubr.f32.mxu0 %v340_v51 }
  0xf9   : > { %524 = vmatmul.mubr.f32.gmra.mrb[18].mxu0 %v339_v52 }
 0x1a8   : > { %v471_v54 = vpop.f32.mrb[0].mxu0 }
 0x1a9   : > { %v473_v55 = vpop.f32.mrb[1].mxu0 }
 0x1ac   : > { %v477_v56 = vpop.f32.mrb[2].mxu0 }
 0x1ad   : > { %v1042_v57 = vpack.c.bf16 %v477_v56, %v471_v54  ;;  %v479_v58 = vpop.f32.mrb[3].mxu0 }
 0x1ae   : > { %v1040_v59 = vpack.c.bf16 %v479_v58, %v473_v55 }
 0x1b0   : > { %v483_v60 = vpop.f32.mrb[4].mxu0  ;;  %1041 = vmatprep.subr.bf16.mxu1 %v1040_v59 }
 0x1b1   : > { %v485_v41 = vpop.f32.mrb[5].mxu0  ;;  %1043 = vmatpush1.bf16.msra.mxu1 %v1042_v57 }
 0x1b4   : > { %v489_v61 = vpop.f32.mrb[6].mxu0 }
 0x1b5   : > { %v1046_v62 = vpack.c.bf16 %v489_v61, %v483_v60  ;;  %v491_v63 = vpop.f32.mrb[7].mxu0 }
 0x1b6   : > { %v1044_v0 = vpack.c.bf16 %v491_v63, %v485_v41 }
 0x1b8   : > { %v495_v1 = vpop.f32.mrb[8].mxu0  ;;  %1045 = vmatprep.subr.bf16.mxu1 %v1044_v0 }
 0x1b9   : > { %v497_v2 = vpop.f32.mrb[9].mxu0  ;;  %1047 = vmatpush1.bf16.msra.mxu1 %v1046_v62 }
 0x1bc   : > { %v501_v3 = vpop.f32.mrb[10].mxu0 }
 0x1bd   : > { %v1050_v4 = vpack.c.bf16 %v501_v3, %v495_v1  ;;  %v503_v5 = vpop.f32.mrb[11].mxu0 }
 0x1be   : > { %v1048_v6 = vpack.c.bf16 %v503_v5, %v497_v2 }
 0x1c0   : > { %v507_v7 = vpop.f32.mrb[12].mxu0  ;;  %1049 = vmatprep.subr.bf16.mxu1 %v1048_v6 }
 0x1c1   : > { %v509_v8 = vpop.f32.mrb[13].mxu0  ;;  %1051 = vmatpush1.bf16.msra.mxu1 %v1050_v4 }
 0x1c4   : > { %v513_v9 = vpop.f32.mrb[14].mxu0 }
 0x1c5   : > { %v1054_v10 = vpack.c.bf16 %v513_v9, %v507_v7  ;;  %v515_v11 = vpop.f32.mrb[15].mxu0 }
 0x1c6   : > { %v1052_v12 = vpack.c.bf16 %v515_v11, %v509_v8 }
 0x1c8   : > { %v519_v13 = vpop.f32.mrb[16].mxu0  ;;  %1053 = vmatprep.subr.bf16.mxu1 %v1052_v12 }
 0x1c9   : > { %v521_v14 = vpop.f32.mrb[17].mxu0  ;;  %1055 = vmatpush1.bf16.msra.mxu1 %v1054_v10 }
 0x1cc   : > { %v525_v15 = vpop.f32.mrb[18].mxu0 }
 0x1cd   : > { %v1058_v16 = vpack.c.bf16 %v525_v15, %v519_v13  ;;  %v527_v17 = vpop.f32.mrb[19].mxu0 }
 0x1ce   : > { %v1056_v18 = vpack.c.bf16 %v527_v17, %v521_v14 }
 0x1d0   : > { %1057 = vmatprep.subr.bf16.mxu1 %v1056_v18 }
 0x1d1   : > { %1059 = vmatpush1.bf16.msra.mxu1 %v1058_v16 }
 0x1d4   : > { %958 = vmatmul.mubr.msk.f32.vlgmr.msra.gmra.mrb[0].mxu1 %vm540_vm0, %v530_v19 }
 0x1d5   : > { %641 = vmatprep.mubr.f32.mxu1 %v1353_v53 }
 0x1d8   : > { %959 = vmatmul.mubr.msk.f32.gmra.mrb[2].mxu1 %vm540_vm0, %v531_v20 }
 0x1d9   : > { %647 = vmatprep.mubr.f32.mxu1 %v1353_v53 }
 0x1dc   : > { %960 = vmatmul.mubr.msk.f32.gmra.mrb[4].mxu1 %vm540_vm0, %v532_v21 }
 0x1dd   : > { %653 = vmatprep.mubr.f32.mxu1 %v1353_v53 }
 0x1e0   : > { %961 = vmatmul.mubr.msk.f32.gmra.mrb[6].mxu1 %vm540_vm0, %v533_v22 }
 0x1e1   : > { %659 = vmatprep.mubr.f32.mxu1 %v1353_v53 }
 0x1e4   : > { %962 = vmatmul.mubr.msk.f32.gmra.mrb[8].mxu1 %vm540_vm0, %v534_v23 }
 0x1e5   : > { %665 = vmatprep.mubr.f32.mxu1 %v1353_v53 }
 0x1e8   : > { %963 = vmatmul.mubr.msk.f32.gmra.mrb[10].mxu1 %vm540_vm0, %v535_v24 }
 0x1e9   : > { %671 = vmatprep.mubr.f32.mxu1 %v1353_v53 }
 0x1ec   : > { %964 = vmatmul.mubr.msk.f32.gmra.mrb[12].mxu1 %vm540_vm0, %v536_v25 }
 0x1ed   : > { %677 = vmatprep.mubr.f32.mxu1 %v1353_v53 }
 0x1f0   : > { %965 = vmatmul.mubr.msk.f32.gmra.mrb[14].mxu1 %vm540_vm0, %v537_v26 }
 0x1f1   : > { %683 = vmatprep.mubr.f32.mxu1 %v1353_v53 }
 0x1f4   : > { %966 = vmatmul.mubr.msk.f32.gmra.mrb[16].mxu1 %vm540_vm0, %v538_v27 }
 0x1f5   : > { %689 = vmatprep.mubr.f32.mxu1 %v1353_v53 }
 0x1f8   : > { %967 = vmatmul.mubr.msk.f32.gmra.mrb[18].mxu1 %vm540_vm0, %v539_v28 }
 0x2a7   : > { %v637_v29 = vpop.f32.mrb[0].mxu1 }
 0x2a8   : > { %v639_v30 = vpop.f32.mrb[1].mxu1  ;;  %v708_v37 = vmul.f32 %v637_v29, %v637_v29 }
 0x2a9   : > { %v709_v38 = vmul.f32 %v639_v30, %v639_v30 }
 0x2aa   : > { %v712_v44 = vmul.f32 0.0013717421, %v708_v37 }
 0x2ab   : > { %v643_v31 = vpop.f32.mrb[2].mxu1  ;;  %v713_v46 = vmul.f32 0.0013717421, %v709_v38 }
 0x2ac   : > { %v645_v32 = vpop.f32.mrb[3].mxu1  ;;  %v710_v45 = vmul.f32 %v643_v31, %v643_v31 }
 0x2ad   : > { %v711_v47 = vmul.f32 %v645_v32, %v645_v32 }
 0x2ae   : > { %v714_v52 = vmul.f32 0.0013717421, %v710_v45 }
 0x2af   : > { %v649_v33 = vpop.f32.mrb[4].mxu1  ;;  %v715_v54 = vmul.f32 0.0013717421, %v711_v47 }
 0x2b0   : > { %v696_v34 = vmul.f32 %v649_v33, %v637_v29  ;;  %v651_v35 = vpop.f32.mrb[5].mxu1  ;;  %v720_v53 = vmul.f32 %v649_v33, %v649_v33 }
 0x2b1   : > { %v697_v36 = vmul.f32 %v651_v35, %v639_v30  ;;  %v721_v55 = vmul.f32 %v651_v35, %v651_v35 }
 0x2b2   : > { %v724_v60 = vmul.f32 0.0013717421, %v720_v53  ;;  %v700_v13 = vmul.f32 0.0013717421, %v696_v34 }
 0x2b3   : > { %v655_v39 = vpop.f32.mrb[6].mxu1  ;;  %v725_v61 = vmul.f32 0.0013717421, %v721_v55  ;;  %v701_v15 = vmul.f32 0.0013717421, %v697_v36 }
 0x2b4   : > { %v698_v40 = vmul.f32 %v655_v39, %v643_v31  ;;  %v657_v42 = vpop.f32.mrb[7].mxu1  ;;  %v722_v41 = vmul.f32 %v655_v39, %v655_v39 }
 0x2b5   : > { %v699_v43 = vmul.f32 %v657_v42, %v645_v32  ;;  %v723_v62 = vmul.f32 %v657_v42, %v657_v42 }
 0x2b6   : > { %v726_v3 = vmul.f32 0.0013717421, %v722_v41  ;;  %v702_v23 = vmul.f32 0.0013717421, %v698_v40 }
 0x2b7   : > { %v661_v48 = vpop.f32.mrb[8].mxu1  ;;  %v727_v5 = vmul.f32 0.0013717421, %v723_v62  ;;  %v703_v24 = vmul.f32 0.0013717421, %v699_v43 }
 0x2b8   : > { %v716_v49 = vsub.f32 %v661_v48, %v712_v44  ;;  %v663_v50 = vpop.f32.mrb[9].mxu1 }
 0x2b9   : > { %v717_v51 = vsub.f32 %v663_v50, %v713_v46 }
 0x2bb   : > { %v667_v56 = vpop.f32.mrb[10].mxu1 }
 0x2bc   : > { %v718_v57 = vsub.f32 %v667_v56, %v714_v52  ;;  %v669_v58 = vpop.f32.mrb[11].mxu1 }
 0x2bd   : > { %v719_v59 = vsub.f32 %v669_v58, %v715_v54 }
 0x2bf   : > { %v673_v63 = vpop.f32.mrb[12].mxu1 }
 0x2c0   : > { %v728_v0 = vsub.f32 %v673_v63, %v724_v60  ;;  %v675_v1 = vpop.f32.mrb[13].mxu1 }
 0x2c1   : > { %v729_v2 = vsub.f32 %v675_v1, %v725_v61 }
 0x2c2   : > { %v732_v4 = vmul.f32 %v728_v0, %v716_v49 }
 0x2c3   : > { %v733_v6 = vmul.f32 %v729_v2, %v717_v51  ;;  %v679_v7 = vpop.f32.mrb[14].mxu1 }
 0x2c4   : > { %v736_v8 = vadd.f32 1e-05, %v732_v4  ;;  %v730_v9 = vsub.f32 %v679_v7, %v726_v3  ;;  %v681_v10 = vpop.f32.mrb[15].mxu1 }
 0x2c5   : > { %v737_v11 = vadd.f32 1e-05, %v733_v6  ;;  %v731_v12 = vsub.f32 %v681_v10, %v727_v5 }
 0x2c6   : > { %1141 = vrcp.f32 %v736_v8  ;;  %v734_v14 = vmul.f32 %v730_v9, %v718_v57 }
 0x2c7   : > { %1143 = vrcp.f32 %v737_v11  ;;  %v735_v16 = vmul.f32 %v731_v12, %v719_v59  ;;  %v685_v17 = vpop.f32.mrb[16].mxu1 }
 0x2c8   : > { %v738_v18 = vadd.f32 1e-05, %v734_v14  ;;  %v704_v19 = vsub.f32 %v685_v17, %v700_v13  ;;  %v687_v20 = vpop.f32.mrb[17].mxu1 }
 0x2c9   : > { %v739_v21 = vadd.f32 1e-05, %v735_v16  ;;  %v705_v22 = vsub.f32 %v687_v20, %v701_v15 }
 0x2ca   : > { %1145 = vrcp.f32 %v738_v18  ;;  %v756_v39 = vmul.f32 %v704_v19, %v704_v19 }
 0x2cb   : > { %1147 = vrcp.f32 %v739_v21  ;;  %v691_v25 = vpop.f32.mrb[18].mxu1  ;;  %v757_v43 = vmul.f32 %v705_v22, %v705_v22 }
 0x2cc   : > { %v706_v26 = vsub.f32 %v691_v25, %v702_v23  ;;  %v693_v27 = vpop.f32.mrb[19].mxu1 }
 0x2cd   : > { %v707_v28 = vsub.f32 %v693_v27, %v703_v24 }
 0x2ce   : > { %v758_v50 = vmul.f32 %v706_v26, %v706_v26 }
 0x2cf   : > { %v759_v52 = vmul.f32 %v707_v28, %v707_v28 }
 0x2d0   : > { %v1142_v29 = vpop.eup %1141 }
 0x2d1   : > { %v1144_v30 = vpop.eup %1143  ;;  %v744_v31 = vmul.f32 %v1142_v29, %v736_v8 }
 0x2d2   : > { %v745_v32 = vmul.f32 %v1144_v30, %v737_v11 }
 0x2d3   : > { %v748_v33 = vsub.f32 2.0, %v744_v31 }
 0x2d4   : > { %v1146_v34 = vpop.eup %1145  ;;  %v749_v35 = vsub.f32 2.0, %v745_v32 }
 0x2d5   : > { %v1148_v36 = vpop.eup %1147  ;;  %v746_v37 = vmul.f32 %v1146_v34, %v738_v18  ;;  %v752_v38 = vmul.f32 %v1142_v29, %v748_v33 }
 0x2d6   : > { %v747_v40 = vmul.f32 %v1148_v36, %v739_v21  ;;  %v753_v42 = vmul.f32 %v1144_v30, %v749_v35 }
 0x2d7   : > { %v750_v44 = vsub.f32 2.0, %v746_v37  ;;  %v760_v45 = vmul.f32 %v756_v39, %v752_v38 }
 0x2d8   : > { %v751_v46 = vsub.f32 2.0, %v747_v40  ;;  %v761_v47 = vmul.f32 %v757_v43, %v753_v42 }
 0x2d9   : > { %v764_v48 = vsub.f32 0.0, %v760_v45  ;;  %v754_v49 = vmul.f32 %v1146_v34, %v750_v44 }
 0x2da   : > { %v765_v51 = vsub.f32 0.0, %v761_v47  ;;  %v755_v53 = vmul.f32 %v1148_v36, %v751_v46  ;;  %v772_v54 = vadd.f32 %v761_v47, %v760_v45 }
 0x2db   : > { %768 = vst [vmem:[%s312_s24] sm:$0xff] %v764_v48  ;;  %v762_v55 = vmul.f32 %v758_v50, %v754_v49 }
 0x2dc   : > { %769 = vst [vmem:[%s312_s24 + $0x8] sm:$0xff] %v765_v51  ;;  %v763_v56 = vmul.f32 %v759_v52, %v755_v53 }
 0x2dd   : > { %v766_v57 = vsub.f32 0.0, %v762_v55  ;;  %v773_v58 = vadd.f32 %v772_v54, %v762_v55 }
 0x2de   : > { %v767_v59 = vsub.f32 0.0, %v763_v56 }
 0x2df   : > { %770 = vst [vmem:[%s312_s24 + $0x10] sm:$0xff] %v766_v57  ;;  %v774_v60 = vadd.f32 %v773_v58, %v763_v56 }
 0x2e0   : > { %771 = vst [vmem:[%s312_s24 + $0x18] sm:$0xff] %v767_v59 }
 0x2e1   : > { %775 = vadd.xlane.f32.xlu0 %v774_v60 }
 0x2e2   : > { %1278 = shalt.err (!%p1275_p5)
}
 0x2e3   : > { %s1279_s6 = scalar_lea.hbm %s1675_s16, 512  ;;  %s1283_s26 = scalar_lea.hbm %s1728_s4, 1024 }
 0x2e4   : > { %p1280_p9 = scmp.ne.s32.totalorder %s1675_s16, %s1279_s6  ;;  %p1284_p11 = scmp.lt.u32.totalorder %s1675_s16, %s1728_s4 }
 0x2e5   : > { %p1285_p2 = scmp.lt.u32.totalorder %s1283_s26, %s1279_s6  ;;  %p1287_p1 = scmp.lt.u32.totalorder %s1279_s6, %s1675_s16 }
 0x2e6   : > { %p1281_p0 = pnand %p1280_p9, %p1755_p13 }
 0x2e7   : > { %p1286_p12 = por %p1285_p2, %p1284_p11 }
 0x2e8   : > { %p1282_p8 = pneg %p1281_p0 }
 0x2e9   : > { %p1288_p6 = por %p1287_p1, %p1286_p12 }
 0x2eb   : > { %p1289_p10 = pnand %p1288_p6, %p1282_p8 }
 0x2ed   : > { %1292 = shalt.err (!%p1289_p10)
}
 0x2ee   : > { %s1355_s24 = smov 256   ;;  %s1356_s12 = smov 16   ;;  %vm785_vm1 = vcmask 0  }
 0x2ef   : > { %1074 = dma.vmem_to_hbm [thread:$0]  (%p1755_p13), %s1669_s10, 512, %s1675_s16, %s788_s9, %s1355_s24, %s1355_s24, %s1356_s12  }
 0x2f0   : > { %p318_p4 = scmp.lt.s32.totalorder %s1408_s22, 1 }
 0x2f2   : > { %s1763_s22 = smov (!%p318_p4, %s1408_s22), 1 }
 0x2f3   : > { %s320_s15 = scalar_lea.vmem %s1729_s5, %s1763_s22 }
 0x36e   : > { %v776_v41 = vpop.xlane.xlu0 %775 }
 0x36f   : > { %v777_v61 = vrot.slane %v776_v41, 4 }
 0x371   : > { %v778_v62 = vadd.f32 %v777_v61, %v776_v41 }
 0x373   : > { %v779_v63 = vrot.slane %v778_v62, 2 }
 0x375   : > { %v780_v0 = vadd.f32 %v779_v63, %v778_v62 }
 0x377   : > { %v781_v1 = vrot.slane %v780_v0, 1 }
 0x379   : > { %v782_v2 = vadd.f32 %v781_v1, %v780_v0 }
 0x37b   : > { %1060 = vpush %v782_v2 }
 0x3ac   : > { %s1061_s28 = spop %1060 }
 0x3ad   : > { %v784_v3 = vstv %s1061_s28 }
 0x3ae   : > { %786 = vst.msk [vmem:[%s320_s15] sm:$0x1] %vm785_vm1, %v784_v3 }
 0x3af PF: > { %s822_s8 = sand.u32 1, %s1331_s18   ;;  %p1756_p13 = scmp.ne.s32.totalorder %s1740_s25, 0 }
 0x3b0   : > { %p1757_p7 = scmp.ge.s32.totalorder %s1343_s21, 2  ;;  %s823_s17 = scalar_lea.sflag [#allocation4], %s822_s8 }
 0x3b2   : > { %p1091_p3 = pnand %p1757_p7, %p1756_p13 }
 0x3b4   : > { %1326 = dma.done.wait (!%p1091_p3), %s823_s17, 512  }
 0x3b5   : > { %1328 = vsyncadd (!%p1091_p3), %s823_s17, 4294966784  ;;  %p23_p5 = scmp.ge.s32.totalorder %s1500_s23, 4   ;;  %s1758_s18 = smov %s1335_s19 }
 0x3b6   : > { %s1759_s19 = smov %s1339_s20  ;;  %s1760_s20 = smov %s1509_s7 }
 0x3b7   : > { %s1761_s21 = smov %s1500_s23  ;;  %25 = sbr.rel (!%p23_p5) target bundleno = 11 (0xb), region = 114 }
 0x3be   :  { %834 = vsyncpa [#allocation3], 1 }
 0x3bf   :  { %836 = vsyncpa [#allocation3 + $0x1], 1 }
 0x3c0   :  { %837 = vsyncpa [#allocation6], 1 }
 0x3c1   :  { %839 = vsyncpa [#allocation6 + $0x1], 1 }
 0x3c2   :  { %840 = vsyncpa [#allocation9], 1 }
 0x3c3   :  { %841 = vsyncpa [#allocation4], 1 }
 0x3c4   :  { %843 = vsyncpa [#allocation4 + $0x1], 1 }

</bundles_post_ra>
